<compile_context>
chip_gen: v6e
topology: v6e:2x2x1
jax: 0.10.0
libtpu: 0.0.40
codegen_flags: <defaults>
</compile_context>

<pallas_src>
import jax
import jax.numpy as jnp
from jax.experimental import pallas as pl
from jax.experimental.pallas import tpu as pltpu


def _ceil_div(a, b):
    return -(-a // b)


def _round_up(a, m):
    return _ceil_div(a, m) * m


def _webp_quant_kernel(x_ref, o_ref):
    # Load in the original dtype; do the quantization math in f32 (an 8-bit
    # mantissa dtype would shift quantization boundaries by one level).
    x = x_ref[...].astype(jnp.float32)
    # uint8 quantization: clip to [0,1], scale to [0,255], truncating cast.
    # Values are non-negative after the clip, so floor == trunc.
    q = jnp.floor(jnp.clip(x, 0.0, 1.0) * 255.0)
    # TODO(synk): cv2 WebP encode/decode (file + lossy codec) has no Pallas
    # equivalent; the codec roundtrip is modeled as identity on the quantized
    # uint8 image.
    loaded = q * (1.0 / 255.0)
    gap = loaded - x                               # gap vs detached original
    o_ref[...] = (x + gap).astype(o_ref.dtype)     # straight-through add


def _hw_policy():
    """Return (max_block_bytes_per_buffer, vmem_limit_bytes, two_cores)."""
    vmem = None
    try:
        info = pltpu.get_tpu_info()
        vmem = getattr(info, "vmem_capacity_bytes", None)
    except Exception:
        vmem = None
    if vmem is not None and vmem >= 100 * 1024 * 1024:
        # v5e / v6e: 128 MiB VMEM, single TensorCore -> big tiles, no split.
        return 8 * 1024 * 1024, 64 * 1024 * 1024, False
    # v7x (64 MiB VMEM, 2 TCs) or unknown: conservative tiles, even split.
    return 4 * 1024 * 1024, 32 * 1024 * 1024, True


def _choose_block_rows(rows, lane, itemsize, max_block_bytes, two_cores):
    """Sublane-aligned block height for the (rows, lane) slab."""
    align = max(8, 32 // itemsize)     # f32 -> 8, bf16/f16 -> 16, int8 -> 32
    if rows <= align:
        return rows                    # full-array block (== array dim, legal)
    max_rows = max(align,
                   (max_block_bytes // (lane * itemsize)) // align * align)
    if two_cores:
        # Even split across the two TensorCores for mid-size inputs.
        target = _round_up(_ceil_div(rows, 2), align)
    else:
        # Single TensorCore: one block if it fits, otherwise the biggest tile.
        target = _round_up(rows, align)
    block_rows = min(target, max_rows)
    if two_cores:
        steps = _ceil_div(rows, block_rows)
        if steps > 1 and steps % 2 == 1:
            # Nudge toward an even step count so neither core sits idle.
            block_rows = min(max_rows,
                             _round_up(_ceil_div(rows, steps + 1), align))
    return block_rows


def webp_forward(x, quality=50):
    """Pallas implementation of WebP.forward(noised_and_cover)[0]."""
    del quality  # TODO(synk): quality only affects the untranslatable codec.
    orig_shape = x.shape
    orig_dtype = x.dtype

    if x.size == 0:
        return x

    if not jnp.issubdtype(orig_dtype, jnp.floating):
        x = x.astype(jnp.float32)
    dtype = x.dtype
    itemsize = jnp.dtype(dtype).itemsize

    xf = x.reshape(-1)
    n = xf.shape[0]

    # Pick a lane width that divides the element count exactly (no pad).
    lane = None
    for cand in (1024, 512, 256, 128):
        if n % cand == 0:
            lane = cand
            break
    padded = False
    if lane is None:
        # Rare ragged case: pad the flat vector up to a multiple of 128.
        lane = 128
        n_pad = _round_up(n, lane)
        xf = jnp.pad(xf, (0, n_pad - n))
        padded = True

    rows = xf.shape[0] // lane
    x2d = xf.reshape(rows, lane)

    max_block_bytes, vmem_limit, two_cores = _hw_policy()
    block_rows = _choose_block_rows(rows, lane, itemsize,
                                    max_block_bytes, two_cores)
    grid_steps = _ceil_div(rows, block_rows)   # partial last tile is masked

    out2d = pl.pallas_call(
        _webp_quant_kernel,
        out_shape=jax.ShapeDtypeStruct((rows, lane), dtype),
        grid_spec=pltpu.PrefetchScalarGridSpec(
            num_scalar_prefetch=0,
            grid=(grid_steps,),
            in_specs=[pl.BlockSpec((block_rows, lane), lambda i: (i, 0))],
            out_specs=pl.BlockSpec((block_rows, lane), lambda i: (i, 0)),
        ),
        compiler_params=pltpu.CompilerParams(
            dimension_semantics=("parallel",),
            vmem_limit_bytes=vmem_limit,
        ),
        # Elementwise, same shape/dtype -> donate the input slab.
        input_output_aliases={0: 0},
    )(x2d)

    out_flat = out2d.reshape(-1)
    if padded:
        out_flat = out_flat[:n]
    out = out_flat.reshape(orig_shape)
    if out.dtype != orig_dtype:
        out = out.astype(orig_dtype)
    return out


if __name__ == "__main__":
    key = jax.random.PRNGKey(0)
    # Small NCHW input consistent with the module's image inputs.
    x = jax.random.uniform(key, (2, 4, 16, 16), dtype=jnp.float32,
                           minval=-0.1, maxval=1.1)

    out = jax.block_until_ready(webp_forward(x, quality=50))

    # Reference check (pure JAX): quantization-only straight-through value.
    ref_q = jnp.floor(jnp.clip(x, 0.0, 1.0) * 255.0) * (1.0 / 255.0)
    ref = x + (ref_q - x)
    assert out.shape == x.shape and out.dtype == x.dtype
    assert jnp.allclose(out, ref, atol=1e-6), "mismatch vs reference"

    print("KERNEL_OK")
</pallas_src>

<mosaic_0001>
module attributes {stable_mosaic.version = 11 : i64} {
  func.func @_webp_quant_kernel(%arg0: i32, %arg1: memref<2x1024xf32, #tpu.memory_space<vmem>>, %arg2: memref<2x1024xf32, #tpu.memory_space<vmem>>) attributes {dimension_semantics = [#tpu.dimension_semantics<parallel>], iteration_bounds = array<i64: 1>, scalar_prefetch = 0 : i64, scratch_operands = 0 : i64, tpu.core_type = #tpu.core_type<tc>, window_params = [{transform_indices = @transform_0, window_bounds = array<i64: 2, 1024>}, {transform_indices = @transform_1, window_bounds = array<i64: 2, 1024>}]} {
    %c0 = arith.constant 0 : index
    %c0_0 = arith.constant 0 : index
    %0 = vector.load %arg1[%c0, %c0_0] : memref<2x1024xf32, #tpu.memory_space<vmem>>, vector<2x1024xf32>
    %cst = arith.constant 0.000000e+00 : f32
    %cst_1 = arith.constant 1.000000e+00 : f32
    %1 = vector.broadcast %cst : f32 to vector<2x1024xf32>
    %2 = arith.maximumf %1, %0 : vector<2x1024xf32>
    %3 = vector.broadcast %cst_1 : f32 to vector<2x1024xf32>
    %4 = arith.minimumf %3, %2 : vector<2x1024xf32>
    %cst_2 = arith.constant 2.550000e+02 : f32
    %5 = vector.broadcast %cst_2 : f32 to vector<2x1024xf32>
    %6 = arith.mulf %4, %5 : vector<2x1024xf32>
    %7 = math.floor %6 : vector<2x1024xf32>
    %cst_3 = arith.constant 0.00392156886 : f32
    %8 = vector.broadcast %cst_3 : f32 to vector<2x1024xf32>
    %9 = arith.mulf %7, %8 : vector<2x1024xf32>
    %10 = arith.subf %9, %0 : vector<2x1024xf32>
    %11 = arith.addf %0, %10 : vector<2x1024xf32>
    %c0_4 = arith.constant 0 : index
    %c0_5 = arith.constant 0 : index
    %12 = vector.load %arg2[%c0_4, %c0_5] : memref<2x1024xf32, #tpu.memory_space<vmem>>, vector<2x1024xf32>
    tpu.vector_store %arg2[%c0_4, %c0_5], %11 {strides = array<i32>} : memref<2x1024xf32, #tpu.memory_space<vmem>>, vector<2x1024xf32>,
    return
  }
  func.func @transform_0(%arg0: i32) -> (i32, i32) {
    %c0_i32 = arith.constant 0 : i32
    %c0_i32_0 = arith.constant 0 : i32
    return %arg0, %c0_i32 : i32, i32
  }
  func.func @transform_1(%arg0: i32) -> (i32, i32) {
    %c0_i32 = arith.constant 0 : i32
    %c0_i32_0 = arith.constant 0 : i32
    return %arg0, %c0_i32 : i32, i32
  }
}

</mosaic_0001>

<bundles_post_ra>
// kernel: tpu_custom_call.1
= control target key start
LH: loop header
LB: loop body
LE: loop exit
PB: predicated region body
PF: predicated region fallthrough
CT: control target
= control target key end

     0   :  { %6 = vsyncpa [#allocation3], 0  ;;  %s118_s0 = inlined_call_operand.hbm [shape: f32[2,1024], index: 0, kind: input, shape index: {}, may-alias: {0,1}]   ;;  %s119_s1 = inlined_call_operand.hbm [shape: f32[2,1024], index: 1, kind: output, shape index: {}, may-alias: {0,1}]  }
   0x1   :  { %7 = vsyncpa [#allocation4], 0  ;;  %s100_s6 = smov [#allocation2]  }
   0x2   :  { %s14_s7 = sshll.u32 %s100_s6, 4  ;;  %s15_s7 = int_to_ptr.vmem [resolvable:$true] %s14_s7 }
   0x3   :  { %s64_s8 = scalar_lea.vmem %s15_s7, 256  ;;  %p69_p1 = scmp.lt.s32.totalorder %s15_s7, %s15_s7 }
   0x4   :  { %p65_p0 = scmp.ne.s32.totalorder %s15_s7, %s64_s8  ;;  %p70_p2 = scmp.lt.s32.totalorder %s64_s8, %s64_s8 }
   0x6   :  { %p71_p3 = por %p70_p2, %p69_p1 }
   0x8   :  { %p72_p4 = pnand %p71_p3, %p65_p0 }
   0xa   :  { %75 = shalt.err (!%p72_p4)
}
   0xb   :  { %17 = dma.hbm_to_vmem [thread:$0]  %s118_s0, 256, %s15_s7, [#allocation3]  }
   0xc   :  { %96 = dma.done.wait [#allocation3], 256  }
   0xd   :  { %97 = vsyncadd [#allocation3], 4294967040  ;;  %v21_v0 = vld [vmem:[#allocation2] sm:$0xff]  ;;  %v22_v1 = vld [vmem:[#allocation2 + $0x8] sm:$0xff]  ;;  %s101_s11 = smov [#allocation5]  }
   0xe   :  { %v23_v2 = vmax.f32 %v21_v0, 0.0  ;;  %v24_v3 = vmax.f32 %v22_v1, 0.0  ;;  %s45_s12 = sshll.u32 %s101_s11, 4  ;;  %s46_s12 = int_to_ptr.vmem [resolvable:$true] %s45_s12 }
   0xf   :  { %s76_s0 = scalar_lea.vmem %s46_s12, 256  ;;  %p81_p6 = scmp.lt.s32.totalorder %s46_s12, %s46_s12 }
  0x10   :  { %v25_v4 = vmin.f32 %v23_v2, 1.0  ;;  %v26_v5 = vmin.f32 %v24_v3, 1.0  ;;  %p77_p5 = scmp.ne.s32.totalorder %s46_s12, %s76_s0  ;;  %p82_p7 = scmp.lt.s32.totalorder %s76_s0, %s76_s0 }
  0x12   :  { %v27_v6 = vmul.f32 255.0, %v25_v4  ;;  %v28_v7 = vmul.f32 255.0, %v26_v5  ;;  %p83_p8 = por %p82_p7, %p81_p6 }
  0x14   :  { %v29_v8 = vfloor.f32 %v27_v6  ;;  %v30_v9 = vfloor.f32 %v28_v7  ;;  %p84_p9 = pnand %p83_p8, %p77_p5 }
  0x16   :  { %v31_v10 = vmul.f32 0.003921569, %v29_v8  ;;  %v32_v11 = vmul.f32 0.003921569, %v30_v9 }
  0x18   :  { %v33_v12 = vsub.f32 %v31_v10, %v21_v0  ;;  %v34_v13 = vsub.f32 %v32_v11, %v22_v1 }
  0x1a   :  { %v35_v14 = vadd.f32 %v33_v12, %v21_v0  ;;  %v36_v15 = vadd.f32 %v34_v13, %v22_v1 }
  0x1c   :  { %37 = vst [vmem:[#allocation5] sm:$0xff] %v35_v14  ;;  %38 = vst [vmem:[#allocation5 + $0x8] sm:$0xff] %v36_v15 }
  0x1d   :  { %87 = shalt.err (!%p84_p9)
}
  0x1e   :  { %48 = dma.vmem_to_hbm [thread:$0]  %s46_s12, 256, %s119_s1, [#allocation4]  }
  0x1f   :  { %98 = dma.done.wait [#allocation4], 256  }
  0x20   :  { %99 = vsyncadd [#allocation4], 4294967040 }
  0x21   :  { %52 = vsyncpa [#allocation3], 1 }
  0x22   :  { %53 = vsyncpa [#allocation4], 1 }

</bundles_post_ra>
